<compile_context>
chip_gen: v7x
topology: tpu7x:2x2x1
jax: 0.10.0
libtpu: 0.0.40
codegen_flags: <defaults>
</compile_context>

<pallas_src>
import functools

import jax
import jax.numpy as jnp
from jax.experimental import pallas as pl
from jax.experimental.pallas import tpu as pltpu


def _round_up(x, m):
    return ((x + m - 1) // m) * m


def _actor_kernel(max_action,
                  s_ref, w1_ref, b1_ref, w2_ref, b2_ref, w3_ref, b3_ref,
                  o_ref):
    """One batch tile of the MLP; batch lives on the lane (last) axis.

    s_ref  : (state_dim,  TB)
    wN_ref : (out, in)   -- PyTorch nn.Linear layout, used directly as W @ x
    bN_ref : (out, 1)    -- broadcasts over the lane/batch axis
    o_ref  : (action_dim, TB)
    """
    x = s_ref[...]

    # Layer 1: relu(W1 @ x + b1)   (MXU matmul, f32 accumulate; VPU add/relu in f32)
    h1 = jnp.dot(w1_ref[...], x.astype(w1_ref.dtype),
                 preferred_element_type=jnp.float32)
    h1 = jnp.maximum(h1 + b1_ref[...], 0.0)

    # Layer 2: relu(W2 @ h1 + b2)
    h2 = jnp.dot(w2_ref[...], h1.astype(w2_ref.dtype),
                 preferred_element_type=jnp.float32)
    h2 = jnp.maximum(h2 + b2_ref[...], 0.0)

    # Layer 3: max_action * tanh(W3 @ h2 + b3)   (tanh -> EUP, f32)
    h3 = jnp.dot(w3_ref[...], h2.astype(w3_ref.dtype),
                 preferred_element_type=jnp.float32)
    o_ref[...] = (max_action * jnp.tanh(h3 + b3_ref[...])).astype(o_ref.dtype)


def actor_forward(s, params, max_action, *, batch_tile=512):
    """Full Actor MLP in one pallas_call.

    s      : (batch, state_dim) f32
    params : (w1, b1, w2, b2, w3, b3) with wN (out, in), bN (out, 1)
    Returns (batch, action_dim) f32.
    """
    w1, b1, w2, b2, w3, b3 = params
    B, state_dim = s.shape
    hidden = w1.shape[0]
    action_dim = w3.shape[0]

    # Lane-dense layout: batch on the 128-lane axis. Pad the batch to a multiple
    # of the tile so every block satisfies the (8,128) layout constraint.
    tb = min(batch_tile, _round_up(max(B, 1), 128))
    b_pad = _round_up(max(B, 1), tb)
    grid = (b_pad // tb,)

    s_t = jnp.pad(s.T.astype(jnp.float32), ((0, 0), (0, b_pad - B)))

    # Stream s/o batch tiles; weights & biases pinned at block (0,0) -> VMEM-resident.
    s_spec = pl.BlockSpec((state_dim, tb), lambda i: (0, i))
    o_spec = pl.BlockSpec((action_dim, tb), lambda i: (0, i))

    def pinned(a):
        return pl.BlockSpec(a.shape, lambda i: (0, 0))

    param_bytes = sum(int(p.size) * p.dtype.itemsize for p in params)
    cost = pl.CostEstimate(
        flops=2 * b_pad * (state_dim * hidden + hidden * hidden
                           + hidden * action_dim),
        transcendentals=b_pad * action_dim,
        bytes_accessed=int(s_t.size) * 4 + b_pad * action_dim * 4 + param_bytes,
    )

    kernel = functools.partial(_actor_kernel, float(max_action))

    out_t = pl.pallas_call(
        kernel,
        out_shape=jax.ShapeDtypeStruct((action_dim, b_pad), jnp.float32),
        grid=grid,
        in_specs=[s_spec, pinned(w1), pinned(b1), pinned(w2), pinned(b2),
                  pinned(w3), pinned(b3)],
        out_specs=o_spec,
        compiler_params=pltpu.CompilerParams(
            dimension_semantics=("parallel",)),
        cost_estimate=cost,
    )(s_t, w1, b1, w2, b2, w3, b3)

    # Drop batch padding and restore (batch, action_dim).
    return out_t[:, :B].T


def init_actor_params(key, state_dim, hidden_width, action_dim,
                      param_dtype=jnp.float32):
    """PyTorch nn.Linear default init: U(-1/sqrt(fan_in), 1/sqrt(fan_in)).

    Weights are stored (out_features, in_features) — same as PyTorch — and may be
    bf16 on v6e/v7x; biases stay f32 (VPU math on v5e has no bf16 path).
    """
    ks = jax.random.split(key, 6)

    def linear(kw, kb, fan_in, fan_out):
        bound = 1.0 / jnp.sqrt(jnp.float32(fan_in))
        w = jax.random.uniform(kw, (fan_out, fan_in), jnp.float32,
                               minval=-bound, maxval=bound).astype(param_dtype)
        b = jax.random.uniform(kb, (fan_out, 1), jnp.float32,
                               minval=-bound, maxval=bound)
        return w, b

    w1, b1 = linear(ks[0], ks[1], state_dim, hidden_width)
    w2, b2 = linear(ks[2], ks[3], hidden_width, hidden_width)
    w3, b3 = linear(ks[4], ks[5], hidden_width, action_dim)
    return (w1, b1, w2, b2, w3, b3)


def actor_reference(s, params, max_action):
    """Pure-JAX reference matching the PyTorch forward."""
    w1, b1, w2, b2, w3, b3 = params
    h = jnp.maximum(s @ w1.astype(jnp.float32).T + b1[:, 0], 0.0)
    h = jnp.maximum(h @ w2.astype(jnp.float32).T + b2[:, 0], 0.0)
    return max_action * jnp.tanh(h @ w3.astype(jnp.float32).T + b3[:, 0])


if __name__ == "__main__":
    state_dim, hidden_width, action_dim = 16, 32, 8
    max_action = 2.0

    key = jax.random.PRNGKey(0)
    k_s, k_p, k_big = jax.random.split(key, 3)
    params = init_actor_params(k_p, state_dim, hidden_width, action_dim)

    # Small case consistent with the module's forward (single env step batch).
    s_small = jax.random.normal(k_s, (2, state_dim), dtype=jnp.float32)
    out_small = jax.block_until_ready(actor_forward(s_small, params, max_action))
    ref_small = actor_reference(s_small, params, max_action)
    assert out_small.shape == (2, action_dim)
    assert jnp.allclose(out_small, ref_small, atol=1e-4, rtol=1e-4), \
        "small-batch mismatch vs reference"

    # Larger batch exercising the batch-tiled, weight-resident grid
    # (2 tiles of 512 columns -> both TensorCores on v7x, streamed s/o DMAs).
    s_big = jax.random.normal(k_big, (1000, state_dim), dtype=jnp.float32)
    out_big = jax.block_until_ready(actor_forward(s_big, params, max_action))
    ref_big = actor_reference(s_big, params, max_action)
    assert out_big.shape == (1000, action_dim)
    assert jnp.allclose(out_big, ref_big, atol=1e-4, rtol=1e-4), \
        "large-batch mismatch vs reference"

    print("KERNEL_OK")
</pallas_src>

<mosaic_0001>
module attributes {stable_mosaic.version = 11 : i64} {
  func.func @_actor_kernel(%arg0: i32, %arg1: memref<16x128xf32, #tpu.memory_space<vmem>>, %arg2: memref<32x16xf32, #tpu.memory_space<vmem>>, %arg3: memref<32x1xf32, #tpu.memory_space<vmem>>, %arg4: memref<32x32xf32, #tpu.memory_space<vmem>>, %arg5: memref<32x1xf32, #tpu.memory_space<vmem>>, %arg6: memref<8x32xf32, #tpu.memory_space<vmem>>, %arg7: memref<8x1xf32, #tpu.memory_space<vmem>>, %arg8: memref<8x128xf32, #tpu.memory_space<vmem>>) attributes {dimension_semantics = [#tpu.dimension_semantics<parallel>], iteration_bounds = array<i64: 1>, scalar_prefetch = 0 : i64, scratch_operands = 0 : i64, tpu.core_type = #tpu.core_type<tc>, window_params = [{transform_indices = @transform_0, window_bounds = array<i64: 16, 128>}, {pipeline_mode = #tpu.pipeline_mode<synchronous>, transform_indices = @transform_1, window_bounds = array<i64: 32, 16>}, {pipeline_mode = #tpu.pipeline_mode<synchronous>, transform_indices = @transform_2, window_bounds = array<i64: 32, 1>}, {pipeline_mode = #tpu.pipeline_mode<synchronous>, transform_indices = @transform_3, window_bounds = array<i64: 32, 32>}, {pipeline_mode = #tpu.pipeline_mode<synchronous>, transform_indices = @transform_4, window_bounds = array<i64: 32, 1>}, {pipeline_mode = #tpu.pipeline_mode<synchronous>, transform_indices = @transform_5, window_bounds = array<i64: 8, 32>}, {pipeline_mode = #tpu.pipeline_mode<synchronous>, transform_indices = @transform_6, window_bounds = array<i64: 8, 1>}, {transform_indices = @transform_7, window_bounds = array<i64: 8, 128>}]} {
    %c0 = arith.constant 0 : index
    %c0_0 = arith.constant 0 : index
    %0 = vector.load %arg1[%c0, %c0_0] : memref<16x128xf32, #tpu.memory_space<vmem>>, vector<16x128xf32>
    %c0_1 = arith.constant 0 : index
    %c0_2 = arith.constant 0 : index
    %1 = vector.load %arg2[%c0_1, %c0_2] : memref<32x16xf32, #tpu.memory_space<vmem>>, vector<32x16xf32>
    %cst = arith.constant dense<0.000000e+00> : vector<32x128xf32>
    %2 = tpu.matmul %1, %0, %cst {dimension_numbers = #tpu.dot_dimension_numbers<[1], [0], [0], [1], [0, 0, 1, 1], [], []>} : vector<32x16xf32>, vector<16x128xf32>, vector<32x128xf32> -> vector<32x128xf32>
    %c0_3 = arith.constant 0 : index
    %c0_4 = arith.constant 0 : index
    %3 = vector.load %arg3[%c0_3, %c0_4] : memref<32x1xf32, #tpu.memory_space<vmem>>, vector<32x1xf32>
    %4 = vector.broadcast %3 : vector<32x1xf32> to vector<32x128xf32>
    %5 = arith.addf %2, %4 : vector<32x128xf32>
    %cst_5 = arith.constant 0.000000e+00 : f32
    %6 = vector.broadcast %cst_5 : f32 to vector<32x128xf32>
    %7 = arith.maximumf %5, %6 : vector<32x128xf32>
    %c0_6 = arith.constant 0 : index
    %c0_7 = arith.constant 0 : index
    %8 = vector.load %arg4[%c0_6, %c0_7] : memref<32x32xf32, #tpu.memory_space<vmem>>, vector<32x32xf32>
    %cst_8 = arith.constant dense<0.000000e+00> : vector<32x128xf32>
    %9 = tpu.matmul %8, %7, %cst_8 {dimension_numbers = #tpu.dot_dimension_numbers<[1], [0], [0], [1], [0, 0, 1, 1], [], []>} : vector<32x32xf32>, vector<32x128xf32>, vector<32x128xf32> -> vector<32x128xf32>
    %c0_9 = arith.constant 0 : index
    %c0_10 = arith.constant 0 : index
    %10 = vector.load %arg5[%c0_9, %c0_10] : memref<32x1xf32, #tpu.memory_space<vmem>>, vector<32x1xf32>
    %11 = vector.broadcast %10 : vector<32x1xf32> to vector<32x128xf32>
    %12 = arith.addf %9, %11 : vector<32x128xf32>
    %cst_11 = arith.constant 0.000000e+00 : f32
    %13 = vector.broadcast %cst_11 : f32 to vector<32x128xf32>
    %14 = arith.maximumf %12, %13 : vector<32x128xf32>
    %c0_12 = arith.constant 0 : index
    %c0_13 = arith.constant 0 : index
    %15 = vector.load %arg6[%c0_12, %c0_13] : memref<8x32xf32, #tpu.memory_space<vmem>>, vector<8x32xf32>
    %cst_14 = arith.constant dense<0.000000e+00> : vector<8x128xf32>
    %16 = tpu.matmul %15, %14, %cst_14 {dimension_numbers = #tpu.dot_dimension_numbers<[1], [0], [0], [1], [0, 0, 1, 1], [], []>} : vector<8x32xf32>, vector<32x128xf32>, vector<8x128xf32> -> vector<8x128xf32>
    %c0_15 = arith.constant 0 : index
    %c0_16 = arith.constant 0 : index
    %17 = vector.load %arg7[%c0_15, %c0_16] : memref<8x1xf32, #tpu.memory_space<vmem>>, vector<8x1xf32>
    %18 = vector.broadcast %17 : vector<8x1xf32> to vector<8x128xf32>
    %19 = arith.addf %16, %18 : vector<8x128xf32>
    %20 = math.tanh %19 : vector<8x128xf32>
    %cst_17 = arith.constant 2.000000e+00 : f32
    %21 = vector.broadcast %cst_17 : f32 to vector<8x128xf32>
    %22 = arith.mulf %21, %20 : vector<8x128xf32>
    %c0_18 = arith.constant 0 : index
    %c0_19 = arith.constant 0 : index
    %23 = vector.load %arg8[%c0_18, %c0_19] : memref<8x128xf32, #tpu.memory_space<vmem>>, vector<8x128xf32>
    tpu.vector_store %arg8[%c0_18, %c0_19], %22 {strides = array<i32>} : memref<8x128xf32, #tpu.memory_space<vmem>>, vector<8x128xf32>,
    return
  }
  func.func @transform_0(%arg0: i32) -> (i32, i32) {
    %c0_i32 = arith.constant 0 : i32
    %c0_i32_0 = arith.constant 0 : i32
    return %c0_i32, %arg0 : i32, i32
  }
  func.func @transform_1(%arg0: i32) -> (i32, i32) {
    %c0_i32 = arith.constant 0 : i32
    %c0_i32_0 = arith.constant 0 : i32
    %c0_i32_1 = arith.constant 0 : i32
    return %c0_i32, %c0_i32_0 : i32, i32
  }
  func.func @transform_2(%arg0: i32) -> (i32, i32) {
    %c0_i32 = arith.constant 0 : i32
    %c0_i32_0 = arith.constant 0 : i32
    %c0_i32_1 = arith.constant 0 : i32
    return %c0_i32, %c0_i32_0 : i32, i32
  }
  func.func @transform_3(%arg0: i32) -> (i32, i32) {
    %c0_i32 = arith.constant 0 : i32
    %c0_i32_0 = arith.constant 0 : i32
    %c0_i32_1 = arith.constant 0 : i32
    return %c0_i32, %c0_i32_0 : i32, i32
  }
  func.func @transform_4(%arg0: i32) -> (i32, i32) {
    %c0_i32 = arith.constant 0 : i32
    %c0_i32_0 = arith.constant 0 : i32
    %c0_i32_1 = arith.constant 0 : i32
    return %c0_i32, %c0_i32_0 : i32, i32
  }
  func.func @transform_5(%arg0: i32) -> (i32, i32) {
    %c0_i32 = arith.constant 0 : i32
    %c0_i32_0 = arith.constant 0 : i32
    %c0_i32_1 = arith.constant 0 : i32
    return %c0_i32, %c0_i32_0 : i32, i32
  }
  func.func @transform_6(%arg0: i32) -> (i32, i32) {
    %c0_i32 = arith.constant 0 : i32
    %c0_i32_0 = arith.constant 0 : i32
    %c0_i32_1 = arith.constant 0 : i32
    return %c0_i32, %c0_i32_0 : i32, i32
  }
  func.func @transform_7(%arg0: i32) -> (i32, i32) {
    %c0_i32 = arith.constant 0 : i32
    %c0_i32_0 = arith.constant 0 : i32
    return %c0_i32, %arg0 : i32, i32
  }
}

</mosaic_0001>

<bundles_post_ra>
// kernel: tpu_custom_call.1
= control target key start
LH: loop header
LB: loop body
LE: loop exit
PB: predicated region body
PF: predicated region fallthrough
CT: control target
= control target key end

     0   :  { %vm57_vm0 = vcmask 130048   ;;  %v500_v4 = vmov 0   ;;  %s626_s0 = inlined_call_operand.vmem [shape: f32[16,128], index: 0, kind: input, shape index: {}]   ;;  %s627_s1 = inlined_call_operand.vmem [shape: f32[32,16], index: 1, kind: input, shape index: {}]   ;;  %s628_s2 = inlined_call_operand.vmem [shape: f32[32,1], index: 2, kind: input, shape index: {}]   ;;  %s629_s3 = inlined_call_operand.vmem [shape: f32[32,32], index: 3, kind: input, shape index: {}]   ;;  %s630_s4 = inlined_call_operand.vmem [shape: f32[32,1], index: 4, kind: input, shape index: {}]   ;;  %s631_s5 = inlined_call_operand.vmem [shape: f32[8,32], index: 5, kind: input, shape index: {}]   ;;  %s632_s6 = inlined_call_operand.vmem [shape: f32[8,1], index: 6, kind: input, shape index: {}]   ;;  %s633_s7 = inlined_call_operand.hbm [shape: f32[8,128], index: 7, kind: output, shape index: {}]  }
   0x1   :  { %v27_v0 = vld [vmem:[%s626_s0] sm:$0xff]  ;;  %v28_v1 = vld [vmem:[%s626_s0 + $0x8] sm:$0xff]  ;;  %472 = vset.pattern.permute.xlu0 %v500_v4  ;;  %473 = vset.pattern.permute.xlu1 %v500_v4  ;;  %v35_v6 = vld [vmem:[%s628_s2 + $0x10] sm:$0xff] }
   0x2   :  { %v29_v2 = vld [vmem:[%s627_s1] sm:$0xff]  ;;  %v449_v3 = vpack.c.bf16 %v28_v1, %v27_v0  ;;  %v30_v7 = vld [vmem:[%s627_s1 + $0x8] sm:$0xff]  ;;  %49 = vperm.xlu1 %473, %v35_v6   ;;  %v31_v9 = vld [vmem:[%s627_s1 + $0x10] sm:$0xff] }
   0x3   :  { %418 = vmatprep.mubr.msk.f32.mxu0 %vm57_vm0, %v29_v2  ;;  %v33_v5 = vld [vmem:[%s628_s2] sm:$0xff]  ;;  %v34_v8 = vld [vmem:[%s628_s2 + $0x8] sm:$0xff]  ;;  %v36_v10 = vld [vmem:[%s628_s2 + $0x18] sm:$0xff] }
   0x4   :  { %450 = vmatprep.subr.bf16.mxu0 %v449_v3  ;;  %39 = vperm.xlu0 %472, %v33_v5  }
   0x5   :  { %452 = vmatpush3.bf16.msra.mxu0 %v449_v3 }
   0x6   :  { %12 = vsyncpa [#allocation3], 0  ;;  %v32_v11 = vld [vmem:[%s627_s1 + $0x18] sm:$0xff]  ;;  %v163_v12 = vld [vmem:[%s630_s4] sm:$0xff]  ;;  %54 = vperm.xlu1 %473, %v36_v10   ;;  %vm187_vm1 = vcmask 261120   ;;  %v501_v39 = vmov 0.0|0.0  }
   0x7   :  { %v164_v13 = vld [vmem:[%s630_s4 + $0x8] sm:$0xff]  ;;  %v165_v14 = vld [vmem:[%s630_s4 + $0x10] sm:$0xff]  ;;  %v166_v15 = vld [vmem:[%s630_s4 + $0x18] sm:$0xff]  ;;  %461 = vmatprep.subr.bf16.mxu0 %v501_v39  ;;  %vm502_vm2 = vmmov 0   ;;  %v503_v40 = vmov 0.0   ;;  %s504_s11 = smov [#allocation2]  }
   0x8   :  { %419 = vmatmul.mubr.msk.f32.vlgmr.msra.gmra.mrb[0].mxu0 %vm57_vm0, %v30_v7  ;;  %44 = vperm.xlu0 %472, %v34_v8   ;;  %v290_v16 = vld [vmem:[%s632_s6] sm:$0xff]  ;;  %v160_v36 = vld [vmem:[%s629_s3 + $0x8] sm:$0xff]  ;;  %v161_v37 = vld [vmem:[%s629_s3 + $0x10] sm:$0xff]  ;;  %s378_s12 = sshll.u32 %s504_s11, 4  ;;  %s379_s12 = int_to_ptr.vmem [resolvable:$true] %s378_s12 }
   0x9   :  { %421 = vmatprep.mubr.msk.f32.mxu0 %vm57_vm0, %v31_v9  ;;  %v159_v17 = vld [vmem:[%s629_s3] sm:$0xff]  ;;  %v162_v38 = vld [vmem:[%s629_s3 + $0x18] sm:$0xff]  ;;  %s476_s13 = scalar_lea.vmem %s379_s12, 128  ;;  %p481_p1 = scmp.lt.s32.totalorder %s379_s12, %s379_s12 }
   0xa   :  { %174 = vperm.xlu1 %473, %v164_v13   ;;  %432 = vmatprep.mubr.msk.f32.mxu1 %vm187_vm1, %v159_v17  ;;  %v289_v59 = vld [vmem:[%s631_s5] sm:$0xff]  ;;  %p477_p0 = scmp.ne.s32.totalorder %s379_s12, %s476_s13  ;;  %p482_p2 = scmp.lt.s32.totalorder %s476_s13, %s476_s13 }
   0xc   :  { %422 = vmatmul.mubr.msk.f32.gmra.mrb[2].mxu0 %vm57_vm0, %v32_v11  ;;  %169 = vperm.xlu0 %472, %v163_v12   ;;  %p483_p3 = por %p482_p2, %p481_p1 }
   0xd   :  { %446 = vmatprep.mubr.msk.f32.mxu0 %vm502_vm2, %v503_v40 }
   0xe   :  { %184 = vperm.xlu1 %473, %v166_v15   ;;  %p484_p4 = pnand %p483_p3, %p477_p0 }
  0x10   :  { %179 = vperm.xlu0 %472, %v165_v14  }
  0x14   :  { %293 = vperm.xlu0 %472, %v290_v16  }
  0x81   :  { %v50_v19 = vpop.permute.xlu1 %49 }
  0x83   :  { %v40_v18 = vpop.permute.xlu0 %39 }
  0x85   :  { %v55_v26 = vpop.permute.xlu1 %54 }
  0x87   :  { %v45_v20 = vpop.permute.xlu0 %44 }
  0x89   :  { %v175_v41 = vpop.permute.xlu1 %174 }
  0x8b   :  { %v170_v42 = vpop.permute.xlu0 %169 }
  0x8d   :  { %v185_v48 = vpop.permute.xlu1 %184 }
  0x8f   :  { %v180_v51 = vpop.permute.xlu0 %179 }
  0x93   :  { %v294_v60 = vpop.permute.xlu0 %293 }
  0xdb   :  { %v420_v21 = vpop.f32.mrb[0].mxu0 }
  0xdc   :  { %v142_v22 = vadd.f32 %v420_v21, %v45_v20  ;;  %v136_v23 = vpop.f32.mrb[1].mxu0 }
  0xdd   :  { %v137_v24 = vadd.f32 %v136_v23, %v40_v18 }
  0xde   :  { %v156_v25 = vmax.f32 %v142_v22, 0.0 }
  0xdf   :  { %v155_v27 = vmax.f32 %v137_v24, 0.0  ;;  %v423_v28 = vpop.f32.mrb[2].mxu0 }
  0xe0   :  { %v152_v29 = vadd.f32 %v423_v28, %v55_v26  ;;  %v146_v30 = vpop.f32.mrb[3].mxu0 }
  0xe1   :  { %v147_v31 = vadd.f32 %v146_v30, %v50_v19  ;;  %v453_v32 = vpack.c.bf16 %v156_v25, %v155_v27 }
  0xe2   :  { %v158_v33 = vmax.f32 %v152_v29, 0.0 }
  0xe3   :  { %v157_v34 = vmax.f32 %v147_v31, 0.0  ;;  %454 = vmatprep.subr.bf16.mxu1 %v453_v32 }
  0xe4   :  { %456 = vmatpush3.bf16.msra.mxu1 %v453_v32 }
  0xe5   :  { %v457_v35 = vpack.c.bf16 %v158_v33, %v157_v34 }
  0xe7   :  { %458 = vmatprep.subr.bf16.mxu1 %v457_v35 }
  0xe8   :  { %460 = vmatpush3.bf16.msra.mxu1 %v457_v35 }
  0xeb   :  { %433 = vmatmul.mubr.msk.f32.vlgmr.msra.gmra.mrb[0].mxu1 %vm187_vm1, %v160_v36 }
  0xec   :  { %435 = vmatprep.mubr.msk.f32.mxu1 %vm187_vm1, %v161_v37 }
  0xef   :  { %436 = vmatmul.mubr.msk.f32.gmra.mrb[2].mxu1 %vm187_vm1, %v162_v38 }
 0x1be   :  { %v434_v43 = vpop.f32.mrb[0].mxu1 }
 0x1bf   :  { %v272_v44 = vadd.f32 %v434_v43, %v175_v41  ;;  %v266_v45 = vpop.f32.mrb[1].mxu1 }
 0x1c0   :  { %v267_v46 = vadd.f32 %v266_v45, %v170_v42 }
 0x1c1   :  { %v286_v47 = vmax.f32 %v272_v44, 0.0 }
 0x1c2   :  { %v285_v49 = vmax.f32 %v267_v46, 0.0  ;;  %v437_v50 = vpop.f32.mrb[2].mxu1 }
 0x1c3   :  { %v282_v52 = vadd.f32 %v437_v50, %v185_v48  ;;  %v276_v53 = vpop.f32.mrb[3].mxu1 }
 0x1c4   :  { %v462_v54 = vpack.c.bf16 %v286_v47, %v285_v49  ;;  %v277_v55 = vadd.f32 %v276_v53, %v180_v51 }
 0x1c5   :  { %v288_v56 = vmax.f32 %v282_v52, 0.0 }
 0x1c6   :  { %v287_v57 = vmax.f32 %v277_v55, 0.0  ;;  %463 = vmatpush3.bf16.msra.mxu0 %v462_v54 }
 0x1c7   :  { %464 = vmatprep.subr.bf16.mxu0 %v501_v39 }
 0x1c8   :  { %v465_v58 = vpack.c.bf16 %v288_v56, %v287_v57 }
 0x1ca   :  { %466 = vmatpush3.bf16.msra.mxu0 %v465_v58 }
 0x1cd   :  { %447 = vmatmul.mubr.msk.f32.vlgmr.msra.gmra.mrb[4].mxu0 %vm187_vm1, %v289_v59 }
 0x2a0   :  { %v365_v61 = vpop.f32.mrb[4].mxu0 }
 0x2a1   :  { %v366_v62 = vadd.f32 %v365_v61, %v294_v60  ;;  %v448_v63 = vpop.f32.mrb[5].mxu0 }
 0x2a3   :  { %474 = vtanh.f32 %v366_v62 }
 0x2ad   :  { %v475_v0 = vpop.eup %474 }
 0x2ae   :  { %v370_v1 = vmul.f32 2.0, %v475_v0 }
 0x2b0   :  { %371 = vst [vmem:[#allocation2] sm:$0xff] %v370_v1 }
 0x2b1   :  { %487 = shalt.err (!%p484_p4)
}
 0x2b2   :  { %s488_s15 = scalar_lea.hbm %s633_s7, 128 }
 0x2b3   :  { %p489_p5 = scmp.ne.s32.totalorder %s633_s7, %s488_s15  ;;  %p492_p6 = scmp.lt.u32.totalorder %s488_s15, %s633_s7 }
 0x2b5   :  { %p494_p7 = pnand %p492_p6, %p489_p5 }
 0x2b7   :  { %497 = shalt.err (!%p494_p7)
}
 0x2b8   :  { %381 = dma.vmem_to_hbm [thread:$0]  %s379_s12, 128, %s633_s7, [#allocation3]  }
 0x2b9   :  { %498 = dma.done.wait [#allocation3], 128  }
 0x2ba   :  { %499 = vsyncadd [#allocation3], 4294967168 }
 0x2bb   :  { %385 = vsyncpa [#allocation3], 1 }

</bundles_post_ra>
